<compile_context>
chip_gen: v6e
topology: v6e:2x2x1
jax: 0.10.0
libtpu: 0.0.40
codegen_flags: <defaults>
</compile_context>

<pallas_src>
import jax
import jax.numpy as jnp
from jax.experimental import pallas as pl
from jax.experimental.pallas import tpu as pltpu


def _round_up(a, m):
    return ((a + m - 1) // m) * m


def residual_kernel(x_ref, w_ref, b_ref, o_ref):
    # x_ref: (TM, H_pad) f32   (streamed row tile, full hidden width)
    # w_ref: (H_pad, TN) bf16  (VMEM-resident W column slice)
    # b_ref: (1, TN)     f32
    # o_ref: (TM, TN)    x.dtype
    tn = o_ref.shape[-1]
    j = pl.program_id(0)                      # column-tile index (outer grid axis)
    off = pl.multiple_of(j * tn, 128)

    x_full = x_ref[...]                       # (TM, H_pad) f32
    # Synthetic fn(x) = x @ W + b : bf16 MXU operands, f32 accumulation.
    y = jnp.dot(x_full.astype(jnp.bfloat16), w_ref[...],
                preferred_element_type=jnp.float32)         # (TM, TN) f32
    # Residual: fn(x) + x, added in f32 on the original-precision x slice.
    x_res = x_ref[:, pl.ds(off, tn)]          # (TM, TN) f32
    o_ref[...] = (y + b_ref[...] + x_res).astype(o_ref.dtype)


def prepare_params(w, b):
    """One-time parameter prep (bf16 cast + lane padding), kept out of the per-call path."""
    H = w.shape[0]
    H_pad = _round_up(H, 128)
    w_p = w.astype(jnp.bfloat16)
    b_p = b.astype(jnp.float32)
    if H_pad != H:
        w_p = jnp.pad(w_p, ((0, H_pad - H), (0, H_pad - H)))
        b_p = jnp.pad(b_p, (0, H_pad - H))
    return w_p, b_p.reshape(1, H_pad)


def residual_forward(x, w_p, b_p):
    """out = (x @ W + b) + x, with W/b pre-prepared by prepare_params()."""
    B, S, H = x.shape
    H_pad = w_p.shape[0]
    R = B * S

    # Row tiling: TM a multiple of 256 for R >= 256; pad rows to a multiple of 256
    # (or 8 for small R) so over-padding is bounded by < 1 row tile.
    if R >= 256:
        TM = 256
        R_pad = _round_up(R, TM)
    else:
        TM = _round_up(R, 8)
        R_pad = TM

    # Column (output/N) tiling: multiple of 256 for the MXU where possible, and always
    # a divisor of H_pad so every block is full (no partially out-of-bounds tiles).
    if H_pad <= 512:
        TN = H_pad
    elif H_pad % 512 == 0:
        TN = 512
    elif H_pad % 256 == 0:
        TN = 256
    else:
        TN = 128

    n_rows = R_pad // TM
    n_cols = H_pad // TN
    grid = (n_cols, n_rows)   # row axis innermost: W column slice stays VMEM-resident

    # Pad x only when needed (typical production shapes are already aligned).
    xf = x.reshape(R, H)
    if R_pad != R or H_pad != H:
        xf = jnp.pad(xf, ((0, R_pad - R), (0, H_pad - H)))

    # Per-generation VMEM budget: capacity minus headroom instead of a flat cap.
    try:
        vmem_cap = int(pltpu.get_tpu_info().vmem_capacity_bytes)
    except Exception:
        vmem_cap = 64 << 20          # conservative fallback: v7x per-TensorCore VMEM
    budget_cap = max(vmem_cap - (12 << 20), 32 << 20)

    def _need(w_bufs):
        return (2 * TM * H_pad * 4         # double-buffered f32 x row tiles
                + w_bufs * H_pad * TN * 2  # bf16 W column slice(s)
                + 2 * TM * TN * 4          # double-buffered f32 out tiles
                + 2 * 8 * TN * 4           # bias (sublane-padded)
                + TM * H_pad * 2           # in-kernel bf16 copy of x for the MXU
                + TM * TN * 4              # f32 matmul result before the residual add
                + (1 << 20))               # misc scratch slack

    itemsize = xf.dtype.itemsize
    cost = pl.CostEstimate(
        flops=2 * R_pad * H_pad * H_pad,
        transcendentals=0,
        bytes_accessed=(n_cols * R_pad * H_pad * itemsize   # x re-streamed per col tile
                        + R_pad * H_pad * itemsize          # out
                        + H_pad * H_pad * 2                 # bf16 W (read once)
                        + H_pad * 4),                       # bias
    )

    def build(single_buffer_w):
        w_kwargs = {"pipeline_mode": pl.Buffered(1)} if single_buffer_w else {}
        vmem_limit = int(min(max(_need(1 if single_buffer_w else 2) + (8 << 20),
                                 32 << 20), budget_cap))
        return pl.pallas_call(
            residual_kernel,
            out_shape=jax.ShapeDtypeStruct((R_pad, H_pad), x.dtype),
            grid_spec=pl.GridSpec(
                grid=grid,
                in_specs=[
                    pl.BlockSpec((TM, H_pad), lambda j, i: (i, 0)),              # x rows
                    pl.BlockSpec((H_pad, TN), lambda j, i: (0, j), **w_kwargs),  # W slice
                    pl.BlockSpec((1, TN), lambda j, i: (0, j)),                  # bias
                ],
                out_specs=pl.BlockSpec((TM, TN), lambda j, i: (i, j)),
            ),
            compiler_params=pltpu.CompilerParams(
                dimension_semantics=("parallel", "parallel"),
                vmem_limit_bytes=vmem_limit,
            ),
            cost_estimate=cost,
        )

    try:
        out = build(single_buffer_w=True)(xf, w_p, b_p)
    except Exception:
        # Fallback if pipeline_mode=pl.Buffered(1) is rejected at construction or lowering.
        out = build(single_buffer_w=False)(xf, w_p, b_p)

    if R_pad != R or H_pad != H:
        out = out[:R, :H]
    return out.reshape(B, S, H)


if __name__ == "__main__":
    key = jax.random.PRNGKey(0)
    kx, kw = jax.random.split(key)

    batch, seq, hidden = 2, 8, 32
    x = jax.random.normal(kx, (batch, seq, hidden), dtype=jnp.float32)

    # Deterministic parameters for the synthetic inner fn (Linear(hidden, hidden)).
    w = jax.random.normal(kw, (hidden, hidden), dtype=jnp.float32) * (1.0 / hidden ** 0.5)
    b = jnp.zeros((hidden,), dtype=jnp.float32)

    w_p, b_p = prepare_params(w, b)        # one-time bf16 cast + lane padding
    out = residual_forward(x, w_p, b_p)
    out = jax.block_until_ready(out)

    # Reference: y = fn(x); return y + x.  (Kernel uses bf16 MXU operands with f32
    # accumulation, so compare at a bf16-appropriate tolerance.)
    ref = (x @ w + b) + x
    assert out.shape == x.shape and out.dtype == x.dtype
    assert jnp.allclose(out, ref, atol=3e-2, rtol=3e-2), "mismatch vs reference"

    print("KERNEL_OK")
</pallas_src>

<mosaic_0001>
module attributes {stable_mosaic.version = 11 : i64} {
  func.func @residual_kernel(%arg0: i32, %arg1: i32, %arg2: memref<16x128xf32, #tpu.memory_space<vmem>>, %arg3: memref<128x128xbf16, #tpu.memory_space<vmem>>, %arg4: memref<1x128xf32, #tpu.memory_space<vmem>>, %arg5: memref<16x128xf32, #tpu.memory_space<vmem>>) attributes {dimension_semantics = [#tpu.dimension_semantics<parallel>, #tpu.dimension_semantics<parallel>], iteration_bounds = array<i64: 1, 1>, scalar_prefetch = 0 : i64, scratch_operands = 0 : i64, tpu.core_type = #tpu.core_type<tc>, window_params = [{transform_indices = @transform_0, window_bounds = array<i64: 16, 128>}, {pipeline_mode = #tpu.pipeline_mode<synchronous>, transform_indices = @transform_1, window_bounds = array<i64: 128, 128>}, {transform_indices = @transform_2, window_bounds = array<i64: 1, 128>}, {transform_indices = @transform_3, window_bounds = array<i64: 16, 128>}]} {
    %c128_i32 = arith.constant 128 : i32
    %0 = arith.muli %arg0, %c128_i32 : i32
    %1 = tpu.assume_multiple %0, 128 : i32
    %c0 = arith.constant 0 : index
    %c0_0 = arith.constant 0 : index
    %2 = vector.load %arg2[%c0, %c0_0] : memref<16x128xf32, #tpu.memory_space<vmem>>, vector<16x128xf32>
    %3 = arith.truncf %2 : vector<16x128xf32> to vector<16x128xbf16>
    %c0_1 = arith.constant 0 : index
    %c0_2 = arith.constant 0 : index
    %4 = vector.load %arg3[%c0_1, %c0_2] : memref<128x128xbf16, #tpu.memory_space<vmem>>, vector<128x128xbf16>
    %cst = arith.constant dense<0.000000e+00> : vector<16x128xf32>
    %5 = tpu.matmul %3, %4, %cst {dimension_numbers = #tpu.dot_dimension_numbers<[1], [0], [0], [1], [0, 0, 1, 1], [], []>} : vector<16x128xbf16>, vector<128x128xbf16>, vector<16x128xf32> -> vector<16x128xf32>
    %c0_3 = arith.constant 0 : index
    %6 = arith.index_cast %1 : i32 to index
    %7 = vector.load %arg2[%c0_3, %6] : memref<16x128xf32, #tpu.memory_space<vmem>>, vector<16x128xf32>
    %c0_4 = arith.constant 0 : index
    %c0_5 = arith.constant 0 : index
    %8 = vector.load %arg4[%c0_4, %c0_5] : memref<1x128xf32, #tpu.memory_space<vmem>>, vector<1x128xf32>
    %9 = vector.broadcast %8 : vector<1x128xf32> to vector<16x128xf32>
    %10 = arith.addf %5, %9 : vector<16x128xf32>
    %11 = arith.addf %10, %7 : vector<16x128xf32>
    %c0_6 = arith.constant 0 : index
    %c0_7 = arith.constant 0 : index
    %12 = vector.load %arg5[%c0_6, %c0_7] : memref<16x128xf32, #tpu.memory_space<vmem>>, vector<16x128xf32>
    tpu.vector_store %arg5[%c0_6, %c0_7], %11 {strides = array<i32>} : memref<16x128xf32, #tpu.memory_space<vmem>>, vector<16x128xf32>,
    return
  }
  func.func @transform_0(%arg0: i32, %arg1: i32) -> (i32, i32) {
    %c0_i32 = arith.constant 0 : i32
    %c0_i32_0 = arith.constant 0 : i32
    return %arg1, %c0_i32 : i32, i32
  }
  func.func @transform_1(%arg0: i32, %arg1: i32) -> (i32, i32) {
    %c0_i32 = arith.constant 0 : i32
    %c0_i32_0 = arith.constant 0 : i32
    return %c0_i32, %arg0 : i32, i32
  }
  func.func @transform_2(%arg0: i32, %arg1: i32) -> (i32, i32) {
    %c0_i32 = arith.constant 0 : i32
    %c0_i32_0 = arith.constant 0 : i32
    return %c0_i32, %arg0 : i32, i32
  }
  func.func @transform_3(%arg0: i32, %arg1: i32) -> (i32, i32) {
    %c0_i32 = arith.constant 0 : i32
    return %arg1, %arg0 : i32, i32
  }
}

module attributes {stable_mosaic.version = 11 : i64} {
  func.func @residual_kernel(%arg0: i32, %arg1: i32, %arg2: memref<16x128xf32, #tpu.memory_space<vmem>>, %arg3: memref<128x128xbf16, #tpu.memory_space<vmem>>, %arg4: memref<1x128xf32, #tpu.memory_space<vmem>>, %arg5: memref<16x128xf32, #tpu.memory_space<vmem>>) attributes {dimension_semantics = [#tpu.dimension_semantics<parallel>, #tpu.dimension_semantics<parallel>], iteration_bounds = array<i64: 1, 1>, scalar_prefetch = 0 : i64, scratch_operands = 0 : i64, tpu.core_type = #tpu.core_type<tc>, window_params = [{transform_indices = @transform_0, window_bounds = array<i64: 16, 128>}, {transform_indices = @transform_1, window_bounds = array<i64: 128, 128>}, {transform_indices = @transform_2, window_bounds = array<i64: 1, 128>}, {transform_indices = @transform_3, window_bounds = array<i64: 16, 128>}]} {
    %c128_i32 = arith.constant 128 : i32
    %0 = arith.muli %arg0, %c128_i32 : i32
    %1 = tpu.assume_multiple %0, 128 : i32
    %c0 = arith.constant 0 : index
    %c0_0 = arith.constant 0 : index
    %2 = vector.load %arg2[%c0, %c0_0] : memref<16x128xf32, #tpu.memory_space<vmem>>, vector<16x128xf32>
    %3 = arith.truncf %2 : vector<16x128xf32> to vector<16x128xbf16>
    %c0_1 = arith.constant 0 : index
    %c0_2 = arith.constant 0 : index
    %4 = vector.load %arg3[%c0_1, %c0_2] : memref<128x128xbf16, #tpu.memory_space<vmem>>, vector<128x128xbf16>
    %cst = arith.constant dense<0.000000e+00> : vector<16x128xf32>
    %5 = tpu.matmul %3, %4, %cst {dimension_numbers = #tpu.dot_dimension_numbers<[1], [0], [0], [1], [0, 0, 1, 1], [], []>} : vector<16x128xbf16>, vector<128x128xbf16>, vector<16x128xf32> -> vector<16x128xf32>
    %c0_3 = arith.constant 0 : index
    %6 = arith.index_cast %1 : i32 to index
    %7 = vector.load %arg2[%c0_3, %6] : memref<16x128xf32, #tpu.memory_space<vmem>>, vector<16x128xf32>
    %c0_4 = arith.constant 0 : index
    %c0_5 = arith.constant 0 : index
    %8 = vector.load %arg4[%c0_4, %c0_5] : memref<1x128xf32, #tpu.memory_space<vmem>>, vector<1x128xf32>
    %9 = vector.broadcast %8 : vector<1x128xf32> to vector<16x128xf32>
    %10 = arith.addf %5, %9 : vector<16x128xf32>
    %11 = arith.addf %10, %7 : vector<16x128xf32>
    %c0_6 = arith.constant 0 : index
    %c0_7 = arith.constant 0 : index
    %12 = vector.load %arg5[%c0_6, %c0_7] : memref<16x128xf32, #tpu.memory_space<vmem>>, vector<16x128xf32>
    tpu.vector_store %arg5[%c0_6, %c0_7], %11 {strides = array<i32>} : memref<16x128xf32, #tpu.memory_space<vmem>>, vector<16x128xf32>,
    return
  }
  func.func @transform_0(%arg0: i32, %arg1: i32) -> (i32, i32) {
    %c0_i32 = arith.constant 0 : i32
    %c0_i32_0 = arith.constant 0 : i32
    return %arg1, %c0_i32 : i32, i32
  }
  func.func @transform_1(%arg0: i32, %arg1: i32) -> (i32, i32) {
    %c0_i32 = arith.constant 0 : i32
    %c0_i32_0 = arith.constant 0 : i32
    return %c0_i32, %arg0 : i32, i32
  }
  func.func @transform_2(%arg0: i32, %arg1: i32) -> (i32, i32) {
    %c0_i32 = arith.constant 0 : i32
    %c0_i32_0 = arith.constant 0 : i32
    return %c0_i32, %arg0 : i32, i32
  }
  func.func @transform_3(%arg0: i32, %arg1: i32) -> (i32, i32) {
    %c0_i32 = arith.constant 0 : i32
    return %arg1, %arg0 : i32, i32
  }
}

</mosaic_0001>

<bundles_post_ra>
// kernel: tpu_custom_call.1
= control target key start
LH: loop header
LB: loop body
LE: loop exit
PB: predicated region body
PF: predicated region fallthrough
CT: control target
= control target key end

     0   :  { %8 = vsyncpa [#allocation3], 0  ;;  %s356_s0 = inlined_call_operand.hbm [shape: f32[16,128], index: 0, kind: input, shape index: {}]   ;;  %s357_s1 = inlined_call_operand.hbm [shape: bf16[128,128], index: 1, kind: input, shape index: {}]   ;;  %s358_s2 = inlined_call_operand.vmem [shape: f32[1,128], index: 2, kind: input, shape index: {}]   ;;  %s359_s3 = inlined_call_operand.hbm [shape: f32[16,128], index: 3, kind: output, shape index: {}]  }
   0x1   :  { %9 = vsyncpa [#allocation6], 0 }
   0x2   :  { %10 = vsyncpa [#allocation4], 0  ;;  %s309_s12 = smov [#allocation2]  }
   0x3   :  { %s16_s13 = sshll.u32 %s309_s12, 4  ;;  %s17_s13 = int_to_ptr.vmem [resolvable:$true] %s16_s13 }
   0x4   :  { %s251_s14 = scalar_lea.vmem %s17_s13, 256  ;;  %p256_p1 = scmp.lt.s32.totalorder %s17_s13, %s17_s13 }
   0x5   :  { %p252_p0 = scmp.ne.s32.totalorder %s17_s13, %s251_s14  ;;  %p257_p2 = scmp.lt.s32.totalorder %s251_s14, %s251_s14 }
   0x7   :  { %p258_p3 = por %p257_p2, %p256_p1 }
   0x9   :  { %p259_p4 = pnand %p258_p3, %p252_p0 }
   0xb   :  { %262 = shalt.err (!%p259_p4)
}
   0xc   :  { %s310_s15 = smov 128   ;;  %s311_s16 = smov 8  }
   0xd   :  { %22 = dma.hbm_to_vmem [thread:$0]  %s356_s0, 256, %s17_s13, [#allocation3], %s310_s15, %s310_s15, %s311_s16  }
   0xe   :  { %s312_s19 = smov [#allocation5]  }
   0xf   :  { %s28_s20 = sshll.u32 %s312_s19, 4  ;;  %s29_s20 = int_to_ptr.vmem [resolvable:$true] %s28_s20 }
  0x10   :  { %s271_s21 = scalar_lea.vmem %s29_s20, 1024  ;;  %p276_p6 = scmp.lt.s32.totalorder %s29_s20, %s29_s20 }
  0x11   :  { %p272_p5 = scmp.ne.s32.totalorder %s29_s20, %s271_s21  ;;  %p277_p7 = scmp.lt.s32.totalorder %s271_s21, %s271_s21 }
  0x13   :  { %p278_p8 = por %p277_p7, %p276_p6 }
  0x15   :  { %p279_p9 = pnand %p278_p8, %p272_p5 }
  0x17   :  { %282 = shalt.err (!%p279_p9)
}
  0x18   :  { %s313_s22 = smov 64   ;;  %s314_s23 = smov 4  }
  0x19   :  { %34 = dma.hbm_to_vmem [thread:$0]  %s357_s1, 1024, %s29_s20, [#allocation6], %s313_s22, %s313_s22, %s314_s23  }
  0x1a   :  { %303 = dma.done.wait [#allocation3], 256  }
  0x1b   :  { %304 = vsyncadd [#allocation3], 4294967040 }
  0x1c   :  { %305 = dma.done.wait [#allocation6], 1024  }
  0x1d   :  { %306 = vsyncadd [#allocation6], 4294966272  ;;  %v315_v0 = vmov 0.0   ;;  %vm316_vm0 = vmmov 0   ;;  %v235_v1 = vld [vmem:[#allocation5 + $0x38] sm:$0xff]   ;;  %v236_v2 = vld [vmem:[#allocation5 + $0x30] sm:$0xff]  }
  0x1e   :  { %206 = vmatprep.subr.bf16.mxu0 %v315_v0  ;;  %222 = vmatprep.mubr.msk.bf16.mxu0 %vm316_vm0, %v315_v0  ;;  %v237_v3 = vld [vmem:[#allocation5 + $0x28] sm:$0xff]   ;;  %v238_v4 = vld [vmem:[#allocation5 + $0x20] sm:$0xff]   ;;  %v239_v5 = vld [vmem:[#allocation5 + $0x18] sm:$0xff]   ;;  %s317_s26 = smov [#allocation7]  }
  0x1f   :  { %207 = vmatpush3.bf16.msra.mxu0 %v235_v1  ;;  %v240_v6 = vld [vmem:[#allocation5 + $0x10] sm:$0xff]   ;;  %v241_v7 = vld [vmem:[#allocation5 + $0x8] sm:$0xff]   ;;  %v242_v8 = vld [vmem:[#allocation5] sm:$0xff]   ;;  %s174_s27 = sshll.u32 %s317_s26, 4  ;;  %s175_s27 = int_to_ptr.vmem [resolvable:$true] %s174_s27 }
  0x20   :  { %208 = vmatprep.subr.bf16.mxu0 %v315_v0  ;;  %v45_v9 = vld [vmem:[#allocation2] sm:$0xff]  ;;  %v46_v10 = vld [vmem:[#allocation2 + $0x8] sm:$0xff]  ;;  %s283_s28 = scalar_lea.vmem %s175_s27, 256  ;;  %p288_p11 = scmp.lt.s32.totalorder %s175_s27, %s175_s27 }
  0x21   :  { %v47_v11 = vpack.c.bf16 %v46_v10, %v45_v9  ;;  %v188_v12 = vld [vmem:[%s358_s2] ss:$0 sm:$0xff]  ;;  %p284_p10 = scmp.ne.s32.totalorder %s175_s27, %s283_s28  ;;  %p289_p12 = scmp.lt.s32.totalorder %s283_s28, %s283_s28 }
  0x23   :  { %209 = vmatpush3.bf16.msra.mxu0 %v236_v2  ;;  %p290_p13 = por %p289_p12, %p288_p11 }
  0x24   :  { %210 = vmatprep.subr.bf16.mxu0 %v315_v0 }
  0x25   :  { %p291_p0 = pnand %p290_p13, %p284_p10 }
  0x27   :  { %211 = vmatpush3.bf16.msra.mxu0 %v237_v3 }
  0x28   :  { %212 = vmatprep.subr.bf16.mxu0 %v315_v0 }
  0x2b   :  { %213 = vmatpush3.bf16.msra.mxu0 %v238_v4 }
  0x2c   :  { %214 = vmatprep.subr.bf16.mxu0 %v315_v0 }
  0x2f   :  { %215 = vmatpush3.bf16.msra.mxu0 %v239_v5 }
  0x30   :  { %216 = vmatprep.subr.bf16.mxu0 %v315_v0 }
  0x33   :  { %217 = vmatpush3.bf16.msra.mxu0 %v240_v6 }
  0x34   :  { %218 = vmatprep.subr.bf16.mxu0 %v315_v0 }
  0x37   :  { %219 = vmatpush3.bf16.msra.mxu0 %v241_v7 }
  0x38   :  { %220 = vmatprep.subr.bf16.mxu0 %v315_v0 }
  0x3b   :  { %221 = vmatpush3.bf16.msra.mxu0 %v242_v8 }
  0x3e   :  { %223 = vmatmul.mubr.bf16.vlgmr.msra.gmra.mxu0 %v47_v11 }
  0xfe   :  { %v158_v13 = vpop.f32.mrf.mxu0 }
  0xff   :  { %v159_v14 = vadd.f32 %v188_v12, %v158_v13 }
 0x100   :  { %v224_v15 = vpop.f32.mrf.mxu0 }
 0x101   :  { %v165_v16 = vadd.f32 %v159_v14, %v45_v9 }
 0x102   :  { %v161_v17 = vpop.f32.mrf.mxu0 }
 0x103   :  { %167 = vst [vmem:[#allocation7] sm:$0xff] %v165_v16  ;;  %v162_v18 = vadd.f32 %v188_v12, %v161_v17 }
 0x104   :  { %v225_v19 = vpop.f32.mrf.mxu0 }
 0x105   :  { %v166_v20 = vadd.f32 %v162_v18, %v46_v10 }
 0x107   :  { %168 = vst [vmem:[#allocation7 + $0x8] sm:$0xff] %v166_v20 }
 0x108   :  { %294 = shalt.err (!%p291_p0)
}
 0x109   :  { %180 = dma.vmem_to_hbm [thread:$0]  %s175_s27, 256, %s359_s3, [#allocation4], %s310_s15, %s310_s15, %s311_s16  }
 0x10a   :  { %307 = dma.done.wait [#allocation4], 256  }
 0x10b   :  { %308 = vsyncadd [#allocation4], 4294967040 }
 0x10c   :  { %184 = vsyncpa [#allocation3], 1 }
 0x10d   :  { %185 = vsyncpa [#allocation6], 1 }
 0x10e   :  { %186 = vsyncpa [#allocation4], 1 }

// kernel: tpu_custom_call.1
= control target key start
LH: loop header
LB: loop body
LE: loop exit
PB: predicated region body
PF: predicated region fallthrough
CT: control target
= control target key end

     0   :  { %8 = vsyncpa [#allocation3], 0  ;;  %s356_s0 = inlined_call_operand.hbm [shape: f32[16,128], index: 0, kind: input, shape index: {}]   ;;  %s357_s1 = inlined_call_operand.hbm [shape: bf16[128,128], index: 1, kind: input, shape index: {}]   ;;  %s358_s2 = inlined_call_operand.vmem [shape: f32[1,128], index: 2, kind: input, shape index: {}]   ;;  %s359_s3 = inlined_call_operand.hbm [shape: f32[16,128], index: 3, kind: output, shape index: {}]  }
   0x1   :  { %9 = vsyncpa [#allocation6], 0 }
   0x2   :  { %10 = vsyncpa [#allocation4], 0  ;;  %s309_s12 = smov [#allocation2]  }
   0x3   :  { %s16_s13 = sshll.u32 %s309_s12, 4  ;;  %s17_s13 = int_to_ptr.vmem [resolvable:$true] %s16_s13 }
   0x4   :  { %s251_s14 = scalar_lea.vmem %s17_s13, 256  ;;  %p256_p1 = scmp.lt.s32.totalorder %s17_s13, %s17_s13 }
   0x5   :  { %p252_p0 = scmp.ne.s32.totalorder %s17_s13, %s251_s14  ;;  %p257_p2 = scmp.lt.s32.totalorder %s251_s14, %s251_s14 }
   0x7   :  { %p258_p3 = por %p257_p2, %p256_p1 }
   0x9   :  { %p259_p4 = pnand %p258_p3, %p252_p0 }
   0xb   :  { %262 = shalt.err (!%p259_p4)
}
   0xc   :  { %s310_s15 = smov 128   ;;  %s311_s16 = smov 8  }
   0xd   :  { %22 = dma.hbm_to_vmem [thread:$0]  %s356_s0, 256, %s17_s13, [#allocation3], %s310_s15, %s310_s15, %s311_s16  }
   0xe   :  { %s312_s19 = smov [#allocation5]  }
   0xf   :  { %s28_s20 = sshll.u32 %s312_s19, 4  ;;  %s29_s20 = int_to_ptr.vmem [resolvable:$true] %s28_s20 }
  0x10   :  { %s271_s21 = scalar_lea.vmem %s29_s20, 1024  ;;  %p276_p6 = scmp.lt.s32.totalorder %s29_s20, %s29_s20 }
  0x11   :  { %p272_p5 = scmp.ne.s32.totalorder %s29_s20, %s271_s21  ;;  %p277_p7 = scmp.lt.s32.totalorder %s271_s21, %s271_s21 }
  0x13   :  { %p278_p8 = por %p277_p7, %p276_p6 }
  0x15   :  { %p279_p9 = pnand %p278_p8, %p272_p5 }
  0x17   :  { %282 = shalt.err (!%p279_p9)
}
  0x18   :  { %s313_s22 = smov 64   ;;  %s314_s23 = smov 4  }
  0x19   :  { %34 = dma.hbm_to_vmem [thread:$0]  %s357_s1, 1024, %s29_s20, [#allocation6], %s313_s22, %s313_s22, %s314_s23  }
  0x1a   :  { %303 = dma.done.wait [#allocation3], 256  }
  0x1b   :  { %304 = vsyncadd [#allocation3], 4294967040 }
  0x1c   :  { %305 = dma.done.wait [#allocation6], 1024  }
  0x1d   :  { %306 = vsyncadd [#allocation6], 4294966272  ;;  %v315_v0 = vmov 0.0   ;;  %vm316_vm0 = vmmov 0   ;;  %v235_v1 = vld [vmem:[#allocation5 + $0x38] sm:$0xff]   ;;  %v236_v2 = vld [vmem:[#allocation5 + $0x30] sm:$0xff]  }
  0x1e   :  { %206 = vmatprep.subr.bf16.mxu0 %v315_v0  ;;  %222 = vmatprep.mubr.msk.bf16.mxu0 %vm316_vm0, %v315_v0  ;;  %v237_v3 = vld [vmem:[#allocation5 + $0x28] sm:$0xff]   ;;  %v238_v4 = vld [vmem:[#allocation5 + $0x20] sm:$0xff]   ;;  %v239_v5 = vld [vmem:[#allocation5 + $0x18] sm:$0xff]   ;;  %s317_s26 = smov [#allocation7]  }
  0x1f   :  { %207 = vmatpush3.bf16.msra.mxu0 %v235_v1  ;;  %v240_v6 = vld [vmem:[#allocation5 + $0x10] sm:$0xff]   ;;  %v241_v7 = vld [vmem:[#allocation5 + $0x8] sm:$0xff]   ;;  %v242_v8 = vld [vmem:[#allocation5] sm:$0xff]   ;;  %s174_s27 = sshll.u32 %s317_s26, 4  ;;  %s175_s27 = int_to_ptr.vmem [resolvable:$true] %s174_s27 }
  0x20   :  { %208 = vmatprep.subr.bf16.mxu0 %v315_v0  ;;  %v45_v9 = vld [vmem:[#allocation2] sm:$0xff]  ;;  %v46_v10 = vld [vmem:[#allocation2 + $0x8] sm:$0xff]  ;;  %s283_s28 = scalar_lea.vmem %s175_s27, 256  ;;  %p288_p11 = scmp.lt.s32.totalorder %s175_s27, %s175_s27 }
  0x21   :  { %v47_v11 = vpack.c.bf16 %v46_v10, %v45_v9  ;;  %v188_v12 = vld [vmem:[%s358_s2] ss:$0 sm:$0xff]  ;;  %p284_p10 = scmp.ne.s32.totalorder %s175_s27, %s283_s28  ;;  %p289_p12 = scmp.lt.s32.totalorder %s283_s28, %s283_s28 }
  0x23   :  { %209 = vmatpush3.bf16.msra.mxu0 %v236_v2  ;;  %p290_p13 = por %p289_p12, %p288_p11 }
  0x24   :  { %210 = vmatprep.subr.bf16.mxu0 %v315_v0 }
  0x25   :  { %p291_p0 = pnand %p290_p13, %p284_p10 }
  0x27   :  { %211 = vmatpush3.bf16.msra.mxu0 %v237_v3 }
  0x28   :  { %212 = vmatprep.subr.bf16.mxu0 %v315_v0 }
  0x2b   :  { %213 = vmatpush3.bf16.msra.mxu0 %v238_v4 }
  0x2c   :  { %214 = vmatprep.subr.bf16.mxu0 %v315_v0 }
  0x2f   :  { %215 = vmatpush3.bf16.msra.mxu0 %v239_v5 }
  0x30   :  { %216 = vmatprep.subr.bf16.mxu0 %v315_v0 }
  0x33   :  { %217 = vmatpush3.bf16.msra.mxu0 %v240_v6 }
  0x34   :  { %218 = vmatprep.subr.bf16.mxu0 %v315_v0 }
  0x37   :  { %219 = vmatpush3.bf16.msra.mxu0 %v241_v7 }
  0x38   :  { %220 = vmatprep.subr.bf16.mxu0 %v315_v0 }
  0x3b   :  { %221 = vmatpush3.bf16.msra.mxu0 %v242_v8 }
  0x3e   :  { %223 = vmatmul.mubr.bf16.vlgmr.msra.gmra.mxu0 %v47_v11 }
  0xfe   :  { %v158_v13 = vpop.f32.mrf.mxu0 }
  0xff   :  { %v159_v14 = vadd.f32 %v188_v12, %v158_v13 }
 0x100   :  { %v224_v15 = vpop.f32.mrf.mxu0 }
 0x101   :  { %v165_v16 = vadd.f32 %v159_v14, %v45_v9 }
 0x102   :  { %v161_v17 = vpop.f32.mrf.mxu0 }
 0x103   :  { %167 = vst [vmem:[#allocation7] sm:$0xff] %v165_v16  ;;  %v162_v18 = vadd.f32 %v188_v12, %v161_v17 }
 0x104   :  { %v225_v19 = vpop.f32.mrf.mxu0 }
 0x105   :  { %v166_v20 = vadd.f32 %v162_v18, %v46_v10 }
 0x107   :  { %168 = vst [vmem:[#allocation7 + $0x8] sm:$0xff] %v166_v20 }
 0x108   :  { %294 = shalt.err (!%p291_p0)
}
 0x109   :  { %180 = dma.vmem_to_hbm [thread:$0]  %s175_s27, 256, %s359_s3, [#allocation4], %s310_s15, %s310_s15, %s311_s16  }
 0x10a   :  { %307 = dma.done.wait [#allocation4], 256  }
 0x10b   :  { %308 = vsyncadd [#allocation4], 4294967040 }
 0x10c   :  { %184 = vsyncpa [#allocation3], 1 }
 0x10d   :  { %185 = vsyncpa [#allocation6], 1 }
 0x10e   :  { %186 = vsyncpa [#allocation4], 1 }

</bundles_post_ra>
